<compile_context>
chip_gen: v7x
topology: tpu7x:2x2x1
jax: 0.10.0
libtpu: 0.0.40
codegen_flags: <defaults>
</compile_context>

<pallas_src>
import jax
import jax.numpy as jnp
from jax.experimental import pallas as pl
from jax.experimental.pallas import tpu as pltpu


def _round_up(x, m):
    return (x + m - 1) // m * m


def _vmem_capacity_bytes():
    """Per-core VMEM capacity; conservative fallback (v7x floor) if unknown."""
    try:
        return int(pltpu.get_tpu_info().vmem_capacity_bytes)
    except Exception:
        return 64 * 1024 * 1024


def _default_tb():
    """Batch tile: 256 fills the 256-wide MXU on v6e/v7x; 128 on v5e & older."""
    try:
        kind = jax.devices()[0].device_kind.lower()
    except Exception:
        kind = ""
    if ("v6" in kind) or ("v7" in kind) or ("7x" in kind):
        return 256
    return 128


# --------------------------------------------------------------------------
# Path 1: VMEM-resident tables, one-hot MXU gather
# --------------------------------------------------------------------------
def _mf_resident_kernel(uid_ref, iid_ref, u_pk_ref, i_pk_ref, out_ref):
    """Score one tile of TB (user, item) pairs against VMEM-resident tables.

    uid_ref, iid_ref : (1, B_pad)   int32  whole id arrays, resident in VMEM
    u_pk_ref         : (2*Fp, NUp)  bf16   user table: transposed, augmented
                                           ([emb,bias,1] rows), hi half on
                                           sublanes [0:Fp], lo half [Fp:2Fp]
    i_pk_ref         : (2*Fp, NIp)  bf16   item table ([emb,1,bias] rows)
    out_ref          : (1, TB)      f32    lane-dense scores for this tile
    """
    tb = out_ref.shape[1]
    start = pl.multiple_of(pl.program_id(0) * tb, tb)
    uid = uid_ref[:, pl.ds(start, tb)]                    # (1, TB) int32
    iid = iid_ref[:, pl.ds(start, tb)]                    # (1, TB) int32

    nup = u_pk_ref.shape[1]
    nip = i_pk_ref.shape[1]
    fpu = u_pk_ref.shape[0] // 2
    fpi = i_pk_ref.shape[0] // 2

    # Cheap one-hot: column iota broadcast vs. id row, bool -> bf16 directly.
    # Ids are compared, never used as addresses (bad ids -> all-zero column).
    oh_u = (jax.lax.broadcasted_iota(jnp.int32, (nup, 1), 0) == uid
            ).astype(jnp.bfloat16)                        # (NUp, TB)
    oh_i = (jax.lax.broadcasted_iota(jnp.int32, (nip, 1), 0) == iid
            ).astype(jnp.bfloat16)                        # (NIp, TB)

    # MXU gather: (2Fp, N) @ (N, TB) -> (2Fp, TB), f32 accumulation.
    gu2 = jnp.dot(u_pk_ref[...], oh_u, preferred_element_type=jnp.float32)
    gi2 = jnp.dot(i_pk_ref[...], oh_i, preferred_element_type=jnp.float32)

    # Recombine hi/lo bf16 halves -> (near-)exact f32 gathered rows, (Fp, TB).
    gu = gu2[:fpu, :] + gu2[fpu:, :]
    gi = gi2[:fpi, :] + gi2[fpi:, :]

    # (Q*I).sum(-1) + bq + bi -- bias/ones columns are folded into the tables.
    out_ref[...] = jnp.sum(gu * gi, axis=0, keepdims=True)  # (1, TB)


def _pack_table_resident(emb, bias, bias_before_ones):
    """Augment, pad, transpose, hi/lo-bf16-split a table for the resident path."""
    emb = emb.astype(jnp.float32)
    n, f = emb.shape
    b = bias.reshape(n, 1).astype(jnp.float32)
    ones = jnp.ones((n, 1), jnp.float32)
    cols = [emb, b, ones] if bias_before_ones else [emb, ones, b]
    aug = jnp.concatenate(cols, axis=1)

    faug = f + 2
    fp = _round_up(faug, 8)
    np_ = _round_up(n, 128)
    aug = jnp.pad(aug, ((0, np_ - n), (0, fp - faug)))

    aug_t = aug.T                                           # (Fp, Np) f32
    hi = aug_t.astype(jnp.bfloat16)
    lo = (aug_t - hi.astype(jnp.float32)).astype(jnp.bfloat16)
    return jnp.concatenate([hi, lo], axis=0)                # (2*Fp, Np) bf16


# --------------------------------------------------------------------------
# Path 2: HBM tables, per-row DMA gather (scalar-prefetched ids)
# --------------------------------------------------------------------------
_GATHER_WINDOW = 16  # max in-flight (user,item) row-pair DMAs per tile


def _mf_gather_kernel(uid_ref, iid_ref, u_hbm, i_hbm, out_ref,
                      u_buf, i_buf, sem):
    """Gather TB user rows + TB item rows from HBM, then score them.

    uid_ref, iid_ref : (B_pad,)      int32  ids in SMEM (scalar prefetch)
    u_hbm            : (NU, Fa_pad)  f32    augmented user table in HBM
    i_hbm            : (NI, Fa_pad)  f32    augmented item table in HBM
    out_ref          : (TB, 1)       f32    scores for this tile
    u_buf, i_buf     : (TB, Fa_pad)  f32    VMEM gather buffers
    sem              : DMA semaphores, shape (2,)
    """
    tb = u_buf.shape[0]
    base = pl.program_id(0) * tb

    def _wait_one_pair():
        # Same-shaped descriptors as the starts -> balanced semaphore counts.
        pltpu.make_async_copy(u_hbm.at[0], u_buf.at[0], sem.at[0]).wait()
        pltpu.make_async_copy(i_hbm.at[0], i_buf.at[0], sem.at[1]).wait()

    @pl.loop(0, tb)
    def _(j):
        u = uid_ref[base + j]
        it = iid_ref[base + j]
        pltpu.make_async_copy(u_hbm.at[u], u_buf.at[j], sem.at[0]).start()
        pltpu.make_async_copy(i_hbm.at[it], i_buf.at[j], sem.at[1]).start()

        @pl.when(j >= _GATHER_WINDOW)      # flow control: bound in-flight DMAs
        def _():
            _wait_one_pair()

    @pl.loop(0, min(_GATHER_WINDOW, tb))   # drain remaining copies
    def _(j):
        _wait_one_pair()

    # dot + b_u + b_i in one fused multiply + lane reduce (bias/ones columns
    # are folded into the augmented rows; padded columns are zero).
    out_ref[...] = jnp.sum(u_buf[...] * i_buf[...], axis=1, keepdims=True)


def _pack_table_rows(emb, bias, bias_before_ones, fa_pad):
    """Augmented, lane-padded per-row table for the DMA-gather path (f32)."""
    emb = emb.astype(jnp.float32)
    n, f = emb.shape
    b = bias.reshape(n, 1).astype(jnp.float32)
    ones = jnp.ones((n, 1), jnp.float32)
    cols = [emb, b, ones] if bias_before_ones else [emb, ones, b]
    aug = jnp.concatenate(cols, axis=1)
    return jnp.pad(aug, ((0, 0), (0, fa_pad - (f + 2))))    # (N, Fa_pad)


# --------------------------------------------------------------------------
# Wrapper
# --------------------------------------------------------------------------
def matrix_factorization_forward(user_id, item_id, user_emb, user_bias,
                                 item_emb, item_bias, *, tb=None,
                                 force_gather=False):
    """Pallas equivalent of MatrixFactorization.forward.  Returns f32[B]."""
    B = int(user_id.shape[0])
    num_users, num_factors = user_emb.shape
    num_items = item_emb.shape[0]

    if tb is None:
        tb = _default_tb()
    vmem_cap = _vmem_capacity_bytes()

    b_pad = _round_up(max(B, 1), tb)
    grid = (b_pad // tb,)

    uid = jnp.pad(user_id.astype(jnp.int32).reshape(-1), (0, b_pad - B))
    iid = jnp.pad(item_id.astype(jnp.int32).reshape(-1), (0, b_pad - B))

    # ---- resident-path VMEM estimate (tables + one-hot masks + intermediates)
    fp = _round_up(num_factors + 2, 8)
    nup = _round_up(num_users, 128)
    nip = _round_up(num_items, 128)
    table_bytes = 2 * fp * (nup + nip) * 2           # hi/lo bf16 tables
    mask_bytes = (nup + nip) * tb * 2                # bf16 one-hot masks
    inter_bytes = 4 * (2 * fp) * tb * 4              # gu2/gi2/gu/gi f32
    ids_bytes = 2 * 4 * b_pad
    resident_need = (table_bytes + mask_bytes + inter_bytes + ids_bytes
                     + (2 << 20))                    # slack for out/internal

    use_resident = (not force_gather) and resident_need <= int(0.40 * vmem_cap)

    if use_resident:
        u_pk = _pack_table_resident(user_emb, user_bias, bias_before_ones=True)
        i_pk = _pack_table_resident(item_emb, item_bias, bias_before_ones=False)
        vmem_limit = int(min(int(0.9 * vmem_cap),
                             max(32 << 20, resident_need + (8 << 20))))
        out = pl.pallas_call(
            _mf_resident_kernel,
            out_shape=jax.ShapeDtypeStruct((1, b_pad), jnp.float32),
            grid=grid,
            in_specs=[
                # Untiled, whole-array VMEM residents -> single buffer each
                # (no per-step DMA, no 2x double-buffering of the tables).
                pl.BlockSpec(memory_space=pltpu.MemorySpace.VMEM),   # user ids
                pl.BlockSpec(memory_space=pltpu.MemorySpace.VMEM),   # item ids
                pl.BlockSpec(memory_space=pltpu.MemorySpace.VMEM),   # user table
                pl.BlockSpec(memory_space=pltpu.MemorySpace.VMEM),   # item table
            ],
            out_specs=pl.BlockSpec((1, tb), lambda g: (0, g)),        # lane-dense
            compiler_params=pltpu.CompilerParams(
                dimension_semantics=("parallel",),
                vmem_limit_bytes=vmem_limit),
        )(uid[None, :], iid[None, :], u_pk, i_pk)
        return out[0, :B]

    # ---- DMA-gather path: tables stay in HBM, per-row async-copy gather ----
    fa_pad = _round_up(num_factors + 2, 128)
    u_rows = _pack_table_rows(user_emb, user_bias, True, fa_pad)
    i_rows = _pack_table_rows(item_emb, item_bias, False, fa_pad)

    gather_need = 2 * tb * fa_pad * 4 + ids_bytes + (2 << 20)
    vmem_limit = int(min(int(0.9 * vmem_cap),
                         max(32 << 20, gather_need + (8 << 20))))

    out = pl.pallas_call(
        _mf_gather_kernel,
        out_shape=jax.ShapeDtypeStruct((b_pad, 1), jnp.float32),
        grid_spec=pltpu.PrefetchScalarGridSpec(
            num_scalar_prefetch=2,                       # uid, iid -> SMEM
            grid=grid,
            in_specs=[
                pl.BlockSpec(memory_space=pl.ANY),       # user table (HBM)
                pl.BlockSpec(memory_space=pl.ANY),       # item table (HBM)
            ],
            out_specs=pl.BlockSpec((tb, 1), lambda g, u_ids, i_ids: (g, 0)),
            scratch_shapes=[
                pltpu.VMEM((tb, fa_pad), jnp.float32),   # gathered user rows
                pltpu.VMEM((tb, fa_pad), jnp.float32),   # gathered item rows
                pltpu.SemaphoreType.DMA((2,)),
            ]),
        compiler_params=pltpu.CompilerParams(
            dimension_semantics=("parallel",),
            vmem_limit_bytes=vmem_limit),
    )(uid, iid, u_rows, i_rows)
    return out[:B, 0]


def init_params(key, num_users, num_items, num_factors, std=0.01):
    """Deterministic normal(std=0.01) init, matching nn.init.normal_."""
    k1, k2, k3, k4 = jax.random.split(key, 4)
    user_emb = std * jax.random.normal(k1, (num_users, num_factors), jnp.float32)
    user_bias = std * jax.random.normal(k2, (num_users, 1), jnp.float32)
    item_emb = std * jax.random.normal(k3, (num_items, num_factors), jnp.float32)
    item_bias = std * jax.random.normal(k4, (num_items, 1), jnp.float32)
    return user_emb, user_bias, item_emb, item_bias


if __name__ == "__main__":
    def reference(uid, iid, ue, ub, ie, ib):
        Q = ue[uid]
        I = ie[iid]
        return (Q * I).sum(-1) + ub[uid].reshape(-1) + ib[iid].reshape(-1)

    key = jax.random.PRNGKey(0)

    # --- small problem: exercises the VMEM-resident one-hot-MXU path ---
    num_users, num_items, num_factors, batch = 32, 48, 16, 8
    k_params, k_u, k_i, key = jax.random.split(key, 4)
    user_emb, user_bias, item_emb, item_bias = init_params(
        k_params, num_users, num_items, num_factors)
    user_id = jax.random.randint(k_u, (batch,), 0, num_users, dtype=jnp.int32)
    item_id = jax.random.randint(k_i, (batch,), 0, num_items, dtype=jnp.int32)

    out = jax.block_until_ready(matrix_factorization_forward(
        user_id, item_id, user_emb, user_bias, item_emb, item_bias))
    ref = reference(user_id, item_id, user_emb, user_bias, item_emb, item_bias)
    assert out.shape == (batch,)
    assert jnp.allclose(out, ref, atol=1e-5, rtol=1e-5), (out, ref)

    # --- larger problem, forced down the HBM DMA-gather path ---
    num_users, num_items, num_factors, batch = 500, 700, 24, 200
    k_params, k_u, k_i, key = jax.random.split(key, 4)
    user_emb, user_bias, item_emb, item_bias = init_params(
        k_params, num_users, num_items, num_factors)
    user_id = jax.random.randint(k_u, (batch,), 0, num_users, dtype=jnp.int32)
    item_id = jax.random.randint(k_i, (batch,), 0, num_items, dtype=jnp.int32)

    out_g = jax.block_until_ready(matrix_factorization_forward(
        user_id, item_id, user_emb, user_bias, item_emb, item_bias,
        force_gather=True))
    ref_g = reference(user_id, item_id, user_emb, user_bias, item_emb, item_bias)
    assert out_g.shape == (batch,)
    assert jnp.allclose(out_g, ref_g, atol=1e-5, rtol=1e-5), (out_g, ref_g)

    print("KERNEL_OK")
</pallas_src>

<mosaic_0001>
module attributes {stable_mosaic.version = 11 : i64} {
  func.func @_mf_resident_kernel(%arg0: i32, %arg1: memref<1x128xi32, #tpu.memory_space<vmem>>, %arg2: memref<1x128xi32, #tpu.memory_space<vmem>>, %arg3: memref<48x128xbf16, #tpu.memory_space<vmem>>, %arg4: memref<48x128xbf16, #tpu.memory_space<vmem>>, %arg5: memref<1x128xf32, #tpu.memory_space<vmem>>) attributes {dimension_semantics = [#tpu.dimension_semantics<parallel>], iteration_bounds = array<i64: 1>, scalar_prefetch = 0 : i64, scratch_operands = 0 : i64, tpu.core_type = #tpu.core_type<tc>, window_params = [{pipeline_mode = #tpu.pipeline_mode<synchronous>, transform_indices = @transform_0, window_bounds = array<i64: 1, 128>}, {pipeline_mode = #tpu.pipeline_mode<synchronous>, transform_indices = @transform_1, window_bounds = array<i64: 1, 128>}, {pipeline_mode = #tpu.pipeline_mode<synchronous>, transform_indices = @transform_2, window_bounds = array<i64: 48, 128>}, {pipeline_mode = #tpu.pipeline_mode<synchronous>, transform_indices = @transform_3, window_bounds = array<i64: 48, 128>}, {transform_indices = @transform_4, window_bounds = array<i64: 1, 128>}]} {
    %c128_i32 = arith.constant 128 : i32
    %0 = arith.muli %arg0, %c128_i32 : i32
    %1 = tpu.assume_multiple %0, 128 : i32
    %c0 = arith.constant 0 : index
    %2 = arith.index_cast %1 : i32 to index
    %3 = vector.load %arg1[%c0, %2] : memref<1x128xi32, #tpu.memory_space<vmem>>, vector<1x128xi32>
    %c0_0 = arith.constant 0 : index
    %4 = arith.index_cast %1 : i32 to index
    %5 = vector.load %arg2[%c0_0, %4] : memref<1x128xi32, #tpu.memory_space<vmem>>, vector<1x128xi32>
    %6 = tpu.iota {dimensions = array<i32: 0>} : vector<128x1xi32>
    %7 = vector.broadcast %6 : vector<128x1xi32> to vector<128x128xi32>
    %8 = vector.broadcast %3 : vector<1x128xi32> to vector<128x128xi32>
    %9 = arith.cmpi eq, %7, %8 : vector<128x128xi32>
    %10 = arith.extui %9 : vector<128x128xi1> to vector<128x128xi32>
    %11 = arith.sitofp %10 : vector<128x128xi32> to vector<128x128xf32>
    %12 = arith.truncf %11 : vector<128x128xf32> to vector<128x128xbf16>
    %13 = tpu.iota {dimensions = array<i32: 0>} : vector<128x1xi32>
    %14 = vector.broadcast %13 : vector<128x1xi32> to vector<128x128xi32>
    %15 = vector.broadcast %5 : vector<1x128xi32> to vector<128x128xi32>
    %16 = arith.cmpi eq, %14, %15 : vector<128x128xi32>
    %17 = arith.extui %16 : vector<128x128xi1> to vector<128x128xi32>
    %18 = arith.sitofp %17 : vector<128x128xi32> to vector<128x128xf32>
    %19 = arith.truncf %18 : vector<128x128xf32> to vector<128x128xbf16>
    %c0_1 = arith.constant 0 : index
    %c0_2 = arith.constant 0 : index
    %20 = vector.load %arg3[%c0_1, %c0_2] : memref<48x128xbf16, #tpu.memory_space<vmem>>, vector<48x128xbf16>
    %cst = arith.constant dense<0.000000e+00> : vector<48x128xf32>
    %21 = tpu.matmul %20, %12, %cst {dimension_numbers = #tpu.dot_dimension_numbers<[1], [0], [0], [1], [0, 0, 1, 1], [], []>} : vector<48x128xbf16>, vector<128x128xbf16>, vector<48x128xf32> -> vector<48x128xf32>
    %c0_3 = arith.constant 0 : index
    %c0_4 = arith.constant 0 : index
    %22 = vector.load %arg4[%c0_3, %c0_4] : memref<48x128xbf16, #tpu.memory_space<vmem>>, vector<48x128xbf16>
    %cst_5 = arith.constant dense<0.000000e+00> : vector<48x128xf32>
    %23 = tpu.matmul %22, %19, %cst_5 {dimension_numbers = #tpu.dot_dimension_numbers<[1], [0], [0], [1], [0, 0, 1, 1], [], []>} : vector<48x128xbf16>, vector<128x128xbf16>, vector<48x128xf32> -> vector<48x128xf32>
    %24 = vector.extract_strided_slice %21 {offsets = [0, 0], sizes = [24, 128], strides = [1, 1]} : vector<48x128xf32> to vector<24x128xf32>
    %25 = vector.extract_strided_slice %21 {offsets = [24, 0], sizes = [24, 128], strides = [1, 1]} : vector<48x128xf32> to vector<24x128xf32>
    %26 = arith.addf %24, %25 : vector<24x128xf32>
    %27 = vector.extract_strided_slice %23 {offsets = [0, 0], sizes = [24, 128], strides = [1, 1]} : vector<48x128xf32> to vector<24x128xf32>
    %28 = vector.extract_strided_slice %23 {offsets = [24, 0], sizes = [24, 128], strides = [1, 1]} : vector<48x128xf32> to vector<24x128xf32>
    %29 = arith.addf %27, %28 : vector<24x128xf32>
    %30 = arith.mulf %26, %29 : vector<24x128xf32>
    %cst_6 = arith.constant dense<0.000000e+00> : vector<128xf32>
    %31 = vector.multi_reduction <add>, %30, %cst_6 [0] : vector<24x128xf32> to vector<128xf32>
    %32 = vector.shape_cast %31 : vector<128xf32> to vector<1x128xf32>
    %c0_7 = arith.constant 0 : index
    %c0_8 = arith.constant 0 : index
    %33 = vector.load %arg5[%c0_7, %c0_8] : memref<1x128xf32, #tpu.memory_space<vmem>>, vector<1x128xf32>
    tpu.vector_store %arg5[%c0_7, %c0_8], %32 {strides = array<i32>} : memref<1x128xf32, #tpu.memory_space<vmem>>, vector<1x128xf32>,
    return
  }
  func.func @transform_0(%arg0: i32) -> (i32, i32) {
    %c0_i32 = arith.constant 0 : i32
    %c0_i32_0 = arith.constant 0 : i32
    %c0_i32_1 = arith.constant 0 : i32
    return %c0_i32, %c0_i32_0 : i32, i32
  }
  func.func @transform_1(%arg0: i32) -> (i32, i32) {
    %c0_i32 = arith.constant 0 : i32
    %c0_i32_0 = arith.constant 0 : i32
    %c0_i32_1 = arith.constant 0 : i32
    return %c0_i32, %c0_i32_0 : i32, i32
  }
  func.func @transform_2(%arg0: i32) -> (i32, i32) {
    %c0_i32 = arith.constant 0 : i32
    %c0_i32_0 = arith.constant 0 : i32
    %c0_i32_1 = arith.constant 0 : i32
    return %c0_i32, %c0_i32_0 : i32, i32
  }
  func.func @transform_3(%arg0: i32) -> (i32, i32) {
    %c0_i32 = arith.constant 0 : i32
    %c0_i32_0 = arith.constant 0 : i32
    %c0_i32_1 = arith.constant 0 : i32
    return %c0_i32, %c0_i32_0 : i32, i32
  }
  func.func @transform_4(%arg0: i32) -> (i32, i32) {
    %c0_i32 = arith.constant 0 : i32
    %c0_i32_0 = arith.constant 0 : i32
    return %c0_i32, %arg0 : i32, i32
  }
}

</mosaic_0001>

<bundles_post_ra>
// kernel: tpu_custom_call.1
= control target key start
LH: loop header
LB: loop body
LE: loop exit
PB: predicated region body
PF: predicated region fallthrough
CT: control target
= control target key end

     0   :  { %9 = vsyncpa [#allocation3], 0  ;;  %s849_s0 = inlined_call_operand.hbm [shape: s32[1,128], index: 0, kind: input, shape index: {}]   ;;  %s850_s1 = inlined_call_operand.vmem [shape: s32[1,128], index: 1, kind: input, shape index: {}]   ;;  %s851_s2 = inlined_call_operand.hbm [shape: bf16[48,128], index: 2, kind: input, shape index: {}]   ;;  %s852_s3 = inlined_call_operand.hbm [shape: bf16[48,128], index: 3, kind: input, shape index: {}]   ;;  %s853_s4 = inlined_call_operand.hbm [shape: f32[1,128], index: 4, kind: output, shape index: {}]  }
   0x1   :  { %10 = vsyncpa [#allocation6], 0 }
   0x2   :  { %11 = vsyncpa [#allocation4], 0  ;;  %s659_s15 = smov [#allocation5]   ;;  %s565_s19 = scalar_lea.hbm %s851_s2, 384 }
   0x3   :  { %s29_s16 = sshll.u32 %s659_s15, 4  ;;  %p566_p0 = scmp.ne.s32.totalorder %s851_s2, %s565_s19  ;;  %s30_s16 = int_to_ptr.vmem [resolvable:$true] %s29_s16 }
   0x4   :  { %p569_p1 = scmp.lt.u32.totalorder %s565_s19, %s851_s2 }
   0x6   :  { %p571_p2 = pnand %p569_p1, %p566_p0 }
   0x8   :  { %574 = shalt.err (!%p571_p2)
}
   0x9   :  { %s575_s24 = scalar_lea.vmem %s30_s16, 384  ;;  %p580_p4 = scmp.lt.s32.totalorder %s30_s16, %s30_s16 }
   0xa   :  { %p576_p3 = scmp.ne.s32.totalorder %s30_s16, %s575_s24  ;;  %p581_p5 = scmp.lt.s32.totalorder %s575_s24, %s575_s24 }
   0xc   :  { %p582_p6 = por %p581_p5, %p580_p4 }
   0xe   :  { %p583_p7 = pnand %p582_p6, %p576_p3 }
  0x10   :  { %586 = shalt.err (!%p583_p7)
}
  0x11   :  { %s660_s25 = smov 64   ;;  %s661_s26 = smov 4  }
  0x12   :  { %35 = dma.hbm_to_vmem [thread:$0]  %s851_s2, 384, %s30_s16, [#allocation6], %s660_s25, %s660_s25, %s661_s26  }
  0x13   :  { %s662_s29 = smov [#allocation2]   ;;  %s663_s5 = smov [#allocation7]  }
  0x14   :  { %s18_s30 = sshll.u32 %s662_s29, 4  ;;  %s41_s6 = sshll.u32 %s663_s5, 4  ;;  %s19_s30 = int_to_ptr.vmem [resolvable:$true] %s18_s30  ;;  %s42_s6 = int_to_ptr.vmem [resolvable:$true] %s41_s6 }
  0x15   :  { %s587_s9 = scalar_lea.hbm %s849_s0, 16 }
  0x16   :  { %p588_p8 = scmp.ne.s32.totalorder %s849_s0, %s587_s9  ;;  %p591_p9 = scmp.lt.u32.totalorder %s587_s9, %s849_s0 }
  0x18   :  { %p593_p10 = pnand %p591_p9, %p588_p8 }
  0x1a   :  { %596 = shalt.err (!%p593_p10)
}
  0x1b   :  { %s597_s2 = scalar_lea.vmem %s19_s30, 16  ;;  %s601_s14 = scalar_lea.vmem %s19_s30, 32 }
  0x1c   :  { %p598_p11 = scmp.ne.s32.totalorder %s19_s30, %s597_s2  ;;  %p602_p12 = scmp.lt.s32.totalorder %s19_s30, %s19_s30 }
  0x1d   :  { %p603_p13 = scmp.lt.s32.totalorder %s601_s14, %s597_s2 }
  0x1f   :  { %p604_p0 = por %p603_p13, %p602_p12 }
  0x21   :  { %p605_p1 = pnand %p604_p0, %p598_p11 }
  0x23   :  { %608 = shalt.err (!%p605_p1)
}
  0x24   :  { %21 = dma.hbm_to_vmem [thread:$0]  %s849_s0, 16, %s19_s30, [#allocation3]  }
  0x25   :  { %s609_s19 = scalar_lea.hbm %s852_s3, 384 }
  0x26   :  { %p610_p2 = scmp.ne.s32.totalorder %s852_s3, %s609_s19  ;;  %p613_p3 = scmp.lt.u32.totalorder %s609_s19, %s852_s3 }
  0x28   :  { %p615_p4 = pnand %p613_p3, %p610_p2 }
  0x2a   :  { %618 = shalt.err (!%p615_p4)
}
  0x2b   :  { %s619_s24 = scalar_lea.vmem %s42_s6, 384  ;;  %p624_p6 = scmp.lt.s32.totalorder %s42_s6, %s42_s6 }
  0x2c   :  { %p620_p5 = scmp.ne.s32.totalorder %s42_s6, %s619_s24  ;;  %p625_p7 = scmp.lt.s32.totalorder %s619_s24, %s619_s24 }
  0x2e   :  { %p626_p8 = por %p625_p7, %p624_p6 }
  0x30   :  { %p627_p9 = pnand %p626_p8, %p620_p5 }
  0x32   :  { %630 = shalt.err (!%p627_p9)
}
  0x33   :  { %47 = dma.hbm_to_vmem [thread:$0]  %s852_s3, 384, %s42_s6, [#allocation6], %s660_s25, %s660_s25, %s661_s26  }
  0x34   :  { %653 = dma.done.wait [#allocation3], 16  }
  0x35   :  { %654 = vsyncadd [#allocation3], 4294967280 }
  0x36   :  { %655 = dma.done.wait [#allocation6], 768  }
  0x37   :  { %656 = vsyncadd [#allocation6], 4294966528  ;;  %v65_v0 = vlaneseq  ;;  %v664_v1 = vmov 0.0   ;;  %vm665_vm0 = vmmov 0   ;;  %v746_v6 = vld [vmem:[#allocation2] ss:$0 sm:$0xff] }
  0x38   :  { %494 = vmatprep.subr.bf16.mxu0 %v664_v1  ;;  %522 = vmatprep.subr.bf16.mxu1 %v664_v1  ;;  %v751_v7 = vld [vmem:[%s850_s1] ss:$0 sm:$0xff]  ;;  %v666_v10 = vmov 1.0|1.0   ;;  %v559_v21 = vld [vmem:[#allocation5] sm:$0xff]   ;;  %v561_v23 = vld [vmem:[#allocation5 + $0x8] sm:$0xff]  }
  0x39   :  { %v737_v2 = vshrl.u32 %v65_v0, 7  ;;  %510 = vmatprep.mubr.msk.bf16.mxu0 %vm665_vm0, %v664_v1  ;;  %538 = vmatprep.mubr.msk.bf16.mxu1 %vm665_vm0, %v664_v1  ;;  %v560_v22 = vld [vmem:[#allocation7] sm:$0xff]   ;;  %v562_v24 = vld [vmem:[#allocation7 + $0x8] sm:$0xff]   ;;  %v563_v25 = vld [vmem:[#allocation5 + $0x10] sm:$0xff]   ;;  %s667_s1 = smov [#allocation8]  }
  0x3a   :  { %v564_v26 = vld [vmem:[#allocation7 + $0x10] sm:$0xff]   ;;  %s388_s26 = sshll.u32 %s667_s1, 4  ;;  %s389_s26 = int_to_ptr.vmem [resolvable:$true] %s388_s26 }
  0x3b   :  { %v67_v3 = vadd.s32 8, %v737_v2  ;;  %v68_v4 = vadd.s32 16, %v737_v2  ;;  %v69_v5 = vadd.s32 24, %v737_v2  ;;  %v70_v8 = vadd.s32 32, %v737_v2  ;;  %s631_s28 = scalar_lea.vmem %s389_s26, 16  ;;  %s635_s29 = scalar_lea.vmem %s389_s26, 32 }
  0x3c   :  { %v71_v9 = vadd.s32 40, %v737_v2  ;;  %vm86_vm1 = vcmp.eq.s32.totalorder %v737_v2, %v746_v6  ;;  %vm146_vm3 = vcmp.eq.s32.totalorder %v737_v2, %v751_v7  ;;  %v72_v11 = vadd.s32 48, %v737_v2  ;;  %p632_p10 = scmp.ne.s32.totalorder %s389_s26, %s631_s28  ;;  %p636_p11 = scmp.lt.s32.totalorder %s389_s26, %s389_s26 }
  0x3d   :  { %vm87_vm2 = vcmp.eq.s32.totalorder %v67_v3, %v746_v6  ;;  %vm147_vm4 = vcmp.eq.s32.totalorder %v67_v3, %v751_v7  ;;  %vm88_vm6 = vcmp.eq.s32.totalorder %v68_v4, %v746_v6  ;;  %vm89_vm7 = vcmp.eq.s32.totalorder %v69_v5, %v746_v6  ;;  %p637_p12 = scmp.lt.s32.totalorder %s635_s29, %s631_s28 }
  0x3e   :  { %vm437_vm5 = vmpackc.low %vm87_vm2, %vm86_vm1  ;;  %vm148_vm8 = vcmp.eq.s32.totalorder %v68_v4, %v751_v7  ;;  %vm149_vm9 = vcmp.eq.s32.totalorder %v69_v5, %v751_v7  ;;  %vm90_vm13 = vcmp.eq.s32.totalorder %v70_v8, %v746_v6  ;;  %vm91_vm14 = vcmp.eq.s32.totalorder %v71_v9, %v746_v6 }
  0x3f   :  { %495 = vmatpush3.bf16.msk.msra.mxu0 %vm437_vm5, %v666_v10  ;;  %vm456_vm10 = vmpackc.low %vm147_vm4, %vm146_vm3  ;;  %v73_v12 = vadd.s32 56, %v737_v2  ;;  %vm150_vm15 = vcmp.eq.s32.totalorder %v70_v8, %v751_v7  ;;  %vm151_vm1 = vcmp.eq.s32.totalorder %v71_v9, %v751_v7  ;;  %vm92_vm4 = vcmp.eq.s32.totalorder %v72_v11, %v746_v6  ;;  %p638_p13 = por %p637_p12, %p636_p11 }
  0x40   :  { %523 = vmatpush3.bf16.msk.msra.mxu1 %vm456_vm10, %v666_v10  ;;  %496 = vmatprep.subr.bf16.mxu0 %v664_v1  ;;  %vm439_vm11 = vmpackc.low %vm89_vm7, %vm88_vm6  ;;  %v74_v13 = vadd.s32 64, %v737_v2  ;;  %v75_v14 = vadd.s32 72, %v737_v2  ;;  %vm152_vm6 = vcmp.eq.s32.totalorder %v72_v11, %v751_v7  ;;  %v76_v15 = vadd.s32 80, %v737_v2 }
  0x41   :  { %524 = vmatprep.subr.bf16.mxu1 %v664_v1  ;;  %vm458_vm12 = vmpackc.low %vm149_vm9, %vm148_vm8  ;;  %vm93_vm5 = vcmp.eq.s32.totalorder %v73_v12, %v746_v6  ;;  %vm153_vm7 = vcmp.eq.s32.totalorder %v73_v12, %v751_v7  ;;  %v77_v16 = vadd.s32 88, %v737_v2  ;;  %v78_v17 = vadd.s32 96, %v737_v2  ;;  %p639_p0 = pnand %p638_p13, %p632_p10 }
  0x42   :  { %vm441_vm2 = vmpackc.low %vm91_vm14, %vm90_vm13  ;;  %vm94_vm10 = vcmp.eq.s32.totalorder %v74_v13, %v746_v6  ;;  %vm155_vm13 = vcmp.eq.s32.totalorder %v75_v14, %v751_v7  ;;  %v79_v18 = vadd.s32 104, %v737_v2  ;;  %v80_v19 = vadd.s32 112, %v737_v2 }
  0x43   :  { %497 = vmatpush3.bf16.msk.msra.mxu0 %vm439_vm11, %v666_v10  ;;  %vm460_vm3 = vmpackc.low %vm151_vm1, %vm150_vm15  ;;  %vm95_vm11 = vcmp.eq.s32.totalorder %v75_v14, %v746_v6  ;;  %vm96_vm1 = vcmp.eq.s32.totalorder %v76_v15, %v746_v6  ;;  %v81_v20 = vadd.s32 120, %v737_v2 }
  0x44   :  { %525 = vmatpush3.bf16.msk.msra.mxu1 %vm458_vm12, %v666_v10  ;;  %498 = vmatprep.subr.bf16.mxu0 %v664_v1  ;;  %vm443_vm8 = vmpackc.low %vm93_vm5, %vm92_vm4  ;;  %vm154_vm12 = vcmp.eq.s32.totalorder %v74_v13, %v751_v7  ;;  %vm157_vm4 = vcmp.eq.s32.totalorder %v77_v16, %v751_v7 }
  0x45   :  { %526 = vmatprep.subr.bf16.mxu1 %v664_v1  ;;  %vm462_vm9 = vmpackc.low %vm153_vm7, %vm152_vm6  ;;  %vm98_vm7 = vcmp.eq.s32.totalorder %v78_v17, %v746_v6 }
  0x46   :  { %vm445_vm14 = vmpackc.low %vm95_vm11, %vm94_vm10  ;;  %vm159_vm10 = vcmp.eq.s32.totalorder %v79_v18, %v751_v7 }
  0x47   :  { %499 = vmatpush3.bf16.msk.msra.mxu0 %vm441_vm2, %v666_v10  ;;  %vm464_vm15 = vmpackc.low %vm155_vm13, %vm154_vm12  ;;  %vm97_vm2 = vcmp.eq.s32.totalorder %v77_v16, %v746_v6  ;;  %vm100_vm13 = vcmp.eq.s32.totalorder %v80_v19, %v746_v6 }
  0x48   :  { %527 = vmatpush3.bf16.msk.msra.mxu1 %vm460_vm3, %v666_v10  ;;  %500 = vmatprep.subr.bf16.mxu0 %v664_v1  ;;  %vm156_vm3 = vcmp.eq.s32.totalorder %v76_v15, %v751_v7  ;;  %vm447_vm5 = vmpackc.low %vm97_vm2, %vm96_vm1  ;;  %vm161_vm1 = vcmp.eq.s32.totalorder %v81_v20, %v751_v7 }
  0x49   :  { %528 = vmatprep.subr.bf16.mxu1 %v664_v1  ;;  %vm466_vm6 = vmpackc.low %vm157_vm4, %vm156_vm3 }
  0x4b   :  { %501 = vmatpush3.bf16.msk.msra.mxu0 %vm443_vm8, %v666_v10  ;;  %vm99_vm8 = vcmp.eq.s32.totalorder %v79_v18, %v746_v6 }
  0x4c   :  { %529 = vmatpush3.bf16.msk.msra.mxu1 %vm462_vm9, %v666_v10  ;;  %502 = vmatprep.subr.bf16.mxu0 %v664_v1  ;;  %vm158_vm9 = vcmp.eq.s32.totalorder %v78_v17, %v751_v7  ;;  %vm449_vm11 = vmpackc.low %vm99_vm8, %vm98_vm7 }
  0x4d   :  { %530 = vmatprep.subr.bf16.mxu1 %v664_v1  ;;  %vm468_vm12 = vmpackc.low %vm159_vm10, %vm158_vm9 }
  0x4f   :  { %503 = vmatpush3.bf16.msk.msra.mxu0 %vm445_vm14, %v666_v10  ;;  %vm101_vm14 = vcmp.eq.s32.totalorder %v81_v20, %v746_v6 }
  0x50   :  { %531 = vmatpush3.bf16.msk.msra.mxu1 %vm464_vm15, %v666_v10  ;;  %504 = vmatprep.subr.bf16.mxu0 %v664_v1  ;;  %vm160_vm15 = vcmp.eq.s32.totalorder %v80_v19, %v751_v7  ;;  %vm451_vm2 = vmpackc.low %vm101_vm14, %vm100_vm13 }
  0x51   :  { %532 = vmatprep.subr.bf16.mxu1 %v664_v1  ;;  %vm470_vm3 = vmpackc.low %vm161_vm1, %vm160_vm15 }
  0x53   :  { %505 = vmatpush3.bf16.msk.msra.mxu0 %vm447_vm5, %v666_v10 }
  0x54   :  { %533 = vmatpush3.bf16.msk.msra.mxu1 %vm466_vm6, %v666_v10  ;;  %506 = vmatprep.subr.bf16.mxu0 %v664_v1 }
  0x55   :  { %534 = vmatprep.subr.bf16.mxu1 %v664_v1 }
  0x57   :  { %507 = vmatpush3.bf16.msk.msra.mxu0 %vm449_vm11, %v666_v10 }
  0x58   :  { %535 = vmatpush3.bf16.msk.msra.mxu1 %vm468_vm12, %v666_v10  ;;  %508 = vmatprep.subr.bf16.mxu0 %v664_v1 }
  0x59   :  { %536 = vmatprep.subr.bf16.mxu1 %v664_v1 }
  0x5b   :  { %509 = vmatpush3.bf16.msk.msra.mxu0 %vm451_vm2, %v666_v10 }
  0x5c   :  { %537 = vmatpush3.bf16.msk.msra.mxu1 %vm470_vm3, %v666_v10 }
  0x5e   :  { %511 = vmatmul.mubr.bf16.vlgmr.msra.gmra.mrb[0].mxu0 %v559_v21 }
  0x5f   :  { %539 = vmatmul.mubr.bf16.vlgmr.msra.gmra.mrb[0].mxu1 %v560_v22  ;;  %514 = vmatprep.mubr.msk.bf16.mxu0 %vm665_vm0, %v664_v1 }
  0x60   :  { %542 = vmatprep.mubr.msk.bf16.mxu1 %vm665_vm0, %v664_v1 }
  0x66   :  { %515 = vmatmul.mubr.bf16.gmra.mrb[4].mxu0 %v561_v23 }
  0x67   :  { %543 = vmatmul.mubr.bf16.gmra.mrb[4].mxu1 %v562_v24  ;;  %518 = vmatprep.mubr.msk.bf16.mxu0 %vm665_vm0, %v664_v1 }
  0x68   :  { %546 = vmatprep.mubr.msk.bf16.mxu1 %vm665_vm0, %v664_v1 }
  0x6e   :  { %519 = vmatmul.mubr.bf16.gmra.mrb[8].mxu0 %v563_v25 }
  0x6f   :  { %547 = vmatmul.mubr.bf16.gmra.mrb[8].mxu1 %v564_v26 }
 0x131   :  { %v260_v27 = vpop.f32.mrb[0].mxu0 }
 0x132   :  { %v341_v28 = vpop.f32.mrb[0].mxu1  ;;  %v512_v29 = vpop.f32.mrb[1].mxu0 }
 0x133   :  { %v540_v30 = vpop.f32.mrb[1].mxu1  ;;  %v263_v31 = vpop.f32.mrb[2].mxu0 }
 0x134   :  { %v344_v32 = vpop.f32.mrb[2].mxu1  ;;  %v513_v33 = vpop.f32.mrb[3].mxu0 }
 0x135   :  { %v541_v34 = vpop.f32.mrb[3].mxu1 }
 0x139   :  { %v268_v35 = vpop.f32.mrb[4].mxu0 }
 0x13a   :  { %v349_v36 = vpop.f32.mrb[4].mxu1  ;;  %v516_v37 = vpop.f32.mrb[5].mxu0 }
 0x13b   :  { %v544_v38 = vpop.f32.mrb[5].mxu1  ;;  %v271_v39 = vpop.f32.mrb[6].mxu0 }
 0x13c   :  { %v364_v40 = vadd.f32 %v271_v39, %v260_v27  ;;  %v352_v41 = vpop.f32.mrb[6].mxu1  ;;  %v517_v42 = vpop.f32.mrb[7].mxu0 }
 0x13d   :  { %v367_v43 = vadd.f32 %v352_v41, %v341_v28  ;;  %v545_v44 = vpop.f32.mrb[7].mxu1 }
 0x13f   :  { %v370_v45 = vmul.f32 %v367_v43, %v364_v40 }
 0x141   :  { %v276_v46 = vpop.f32.mrb[8].mxu0 }
 0x142   :  { %v365_v47 = vadd.f32 %v276_v46, %v263_v31  ;;  %v357_v48 = vpop.f32.mrb[8].mxu1  ;;  %v520_v49 = vpop.f32.mrb[9].mxu0 }
 0x143   :  { %v368_v50 = vadd.f32 %v357_v48, %v344_v32  ;;  %v548_v51 = vpop.f32.mrb[9].mxu1  ;;  %v279_v52 = vpop.f32.mrb[10].mxu0 }
 0x144   :  { %v366_v53 = vadd.f32 %v279_v52, %v268_v35  ;;  %v360_v54 = vpop.f32.mrb[10].mxu1  ;;  %v521_v55 = vpop.f32.mrb[11].mxu0 }
 0x145   :  { %v371_v56 = vmul.f32 %v368_v50, %v365_v47  ;;  %v369_v57 = vadd.f32 %v360_v54, %v349_v36  ;;  %v549_v58 = vpop.f32.mrb[11].mxu1 }
 0x147   :  { %v373_v59 = vadd.f32 %v371_v56, %v370_v45  ;;  %v372_v60 = vmul.f32 %v369_v57, %v366_v53 }
 0x149   :  { %v374_v61 = vadd.f32 %v373_v59, %v372_v60 }
 0x14b   :  { %v375_v62 = vrot.slane %v374_v61, 4 }
 0x14d   :  { %v376_v63 = vadd.f32 %v375_v62, %v374_v61 }
 0x14f   :  { %v377_v0 = vrot.slane %v376_v63, 2 }
 0x151   :  { %v378_v1 = vadd.f32 %v377_v0, %v376_v63 }
 0x153   :  { %v379_v2 = vrot.slane %v378_v1, 1 }
 0x155   :  { %v380_v3 = vadd.f32 %v379_v2, %v378_v1 }
 0x157   :  { %381 = vst [vmem:[#allocation8] sm:$0x1] %v380_v3 }
 0x158   :  { %642 = shalt.err (!%p639_p0)
}
 0x159   :  { %s643_s6 = scalar_lea.hbm %s853_s4, 16 }
 0x15a   :  { %p644_p1 = scmp.ne.s32.totalorder %s853_s4, %s643_s6  ;;  %p647_p2 = scmp.lt.u32.totalorder %s643_s6, %s853_s4 }
 0x15c   :  { %p649_p3 = pnand %p647_p2, %p644_p1 }
 0x15e   :  { %652 = shalt.err (!%p649_p3)
}
 0x15f   :  { %391 = dma.vmem_to_hbm [thread:$0]  %s389_s26, 16, %s853_s4, [#allocation4]  }
 0x160   :  { %657 = dma.done.wait [#allocation4], 16  }
 0x161   :  { %658 = vsyncadd [#allocation4], 4294967280 }
 0x162   :  { %395 = vsyncpa [#allocation3], 1 }
 0x163   :  { %396 = vsyncpa [#allocation6], 1 }
 0x164   :  { %397 = vsyncpa [#allocation4], 1 }

</bundles_post_ra>
